<compile_context>
chip_gen: v7x
topology: tpu7x:2x2x1
jax: 0.10.0
libtpu: 0.0.40
codegen_flags: <defaults>
</compile_context>

<pallas_src>
import functools

import jax
import jax.numpy as jnp
from jax import lax
from jax.experimental import pallas as pl
from jax.experimental.pallas import tpu as pltpu

LANE = 128
SUBLANE = 8


def _round_up(x, m):
    return (x + m - 1) // m * m


def _actor_kernel(x_ref, w_ref, b_ref, out_ref, *, ns_pad, lane_pad, num_actions):
    """One fused MLP forward on a (TM, ns_pad) batch tile.

    w_ref rows (all lane_pad wide, zero-padded, bf16):
      [0 : ns_pad]                        -> W1  (state  -> hidden)
      [ns_pad : ns_pad + lane_pad]        -> W2  (hidden -> hidden)
      [ns_pad + lane_pad : end]           -> Wh  (hidden -> [mean | log_std])
    b_ref rows (f32): 0 -> b1, 1 -> b2, 2 -> bh ([mean | log_std]).
    """
    x = x_ref[...].astype(jnp.bfloat16)

    w1 = w_ref[0:ns_pad, :]
    w2 = w_ref[ns_pad:ns_pad + lane_pad, :]
    wh = w_ref[ns_pad + lane_pad:ns_pad + 2 * lane_pad, :]

    b = b_ref[...]                                    # (3, lane_pad) f32
    b1 = b[0:1, :]
    b2 = b[1:2, :]
    bh = b[2:3, :]

    # linear1 + relu  (bf16 MXU operands, f32 accumulate, f32 elementwise)
    h1 = jnp.maximum(jnp.dot(x, w1, preferred_element_type=jnp.float32) + b1, 0.0)
    # linear2 + relu
    h2 = jnp.maximum(
        jnp.dot(h1.astype(jnp.bfloat16), w2, preferred_element_type=jnp.float32) + b2,
        0.0)
    # fused heads: cols [0:A] = mean (raw), cols [A:2A] = log_std
    raw = jnp.dot(h2.astype(jnp.bfloat16), wh, preferred_element_type=jnp.float32) + bh

    # std = exp(clip(log_std, -5, 2)); exp runs on the EUP slot (free next to
    # MXU/VPU).  Lane mask keeps the mean columns untouched.
    col = lax.broadcasted_iota(jnp.int32, raw.shape, 1)
    std_val = jnp.exp(jnp.clip(raw, -5.0, 2.0))
    out_ref[...] = jnp.where(col < num_actions, raw, std_val)


def actor_forward(state, w_packed, b_packed, *, num_actions, block_batch=256):
    """state: (B, num_states) f32.  w_packed/b_packed from pack_actor_params.

    Returns (mean, std), each (B, num_actions) f32.
    """
    B, ns = state.shape
    ns_pad = _round_up(ns, SUBLANE)

    # Pad batch to a sublane multiple and state features to ns_pad so every
    # block shape cleanly satisfies the (8, 128) constraint.
    B_pad = _round_up(B, SUBLANE)
    if (B_pad != B) or (ns_pad != ns):
        state = jnp.pad(state, ((0, B_pad - B), (0, ns_pad - ns)))

    w_rows, lane_pad = w_packed.shape
    assert w_rows == ns_pad + 2 * lane_pad, "packed weight layout mismatch"

    tm = min(B_pad, _round_up(block_batch, SUBLANE))
    grid = (pl.cdiv(B_pad, tm),)

    kernel = functools.partial(
        _actor_kernel, ns_pad=ns_pad, lane_pad=lane_pad, num_actions=num_actions)

    cost = pl.CostEstimate(
        flops=2 * B_pad * (ns_pad * lane_pad + 2 * lane_pad * lane_pad),
        transcendentals=B_pad * lane_pad,
        bytes_accessed=(state.size * 4 + w_packed.size * 2
                        + b_packed.size * 4 + B_pad * lane_pad * 4),
    )

    out = pl.pallas_call(
        kernel,
        out_shape=jax.ShapeDtypeStruct((B_pad, lane_pad), jnp.float32),
        grid=grid,
        in_specs=[
            pl.BlockSpec((tm, ns_pad), lambda i: (i, 0)),        # batch tile
            pl.BlockSpec((w_rows, lane_pad), lambda i: (0, 0)),  # weights, resident
            pl.BlockSpec((3, lane_pad), lambda i: (0, 0)),       # biases, resident
        ],
        out_specs=pl.BlockSpec((tm, lane_pad), lambda i: (i, 0)),
        compiler_params=pltpu.CompilerParams(dimension_semantics=("parallel",)),
        cost_estimate=cost,
    )(state, w_packed, b_packed)

    mean = out[:B, :num_actions]
    std = out[:B, num_actions:2 * num_actions]
    return mean, std


def pack_actor_params(p, num_states, num_actions, hidden_size):
    """Pack the 8 Linear params into one bf16 weight buffer + one f32 bias buffer.

    Weight layout (rows, all zero-padded to lane_pad columns):
      [0:num_states]                       W1 (num_states, hidden)
      [ns_pad : ns_pad+hidden]             W2 (hidden, hidden)
      [ns_pad+lane_pad : +hidden]          [Wm | Ws] (hidden, 2*num_actions)
    """
    ns_pad = _round_up(num_states, SUBLANE)
    lane_pad = max(_round_up(hidden_size, LANE), _round_up(2 * num_actions, LANE))
    A, H = num_actions, hidden_size

    w = jnp.zeros((ns_pad + 2 * lane_pad, lane_pad), jnp.float32)
    w = w.at[:num_states, :H].set(p["w1"])
    w = w.at[ns_pad:ns_pad + H, :H].set(p["w2"])
    w = w.at[ns_pad + lane_pad:ns_pad + lane_pad + H, :A].set(p["wm"])
    w = w.at[ns_pad + lane_pad:ns_pad + lane_pad + H, A:2 * A].set(p["ws"])

    b = jnp.zeros((3, lane_pad), jnp.float32)
    b = b.at[0, :H].set(p["b1"])
    b = b.at[1, :H].set(p["b2"])
    b = b.at[2, :A].set(p["bm"])
    b = b.at[2, A:2 * A].set(p["bs"])

    return w.astype(jnp.bfloat16), b


def init_actor_params(num_states, num_actions, hidden_size, seed=0):
    """Deterministic init mimicking nn.Linear's U(-1/sqrt(fan_in), 1/sqrt(fan_in)).

    Weights stored as (in_features, out_features); biases as (out_features,).
    """
    key = jax.random.PRNGKey(seed)
    ks = jax.random.split(key, 8)

    def lin(kw, kb, fan_in, fan_out):
        bound = 1.0 / jnp.sqrt(jnp.float32(fan_in))
        w = jax.random.uniform(kw, (fan_in, fan_out), jnp.float32, -bound, bound)
        b = jax.random.uniform(kb, (fan_out,), jnp.float32, -bound, bound)
        return w, b

    w1, b1 = lin(ks[0], ks[1], num_states, hidden_size)
    w2, b2 = lin(ks[2], ks[3], hidden_size, hidden_size)
    wm, bm = lin(ks[4], ks[5], hidden_size, num_actions)
    ws, bs = lin(ks[6], ks[7], hidden_size, num_actions)
    return dict(w1=w1, b1=b1, w2=w2, b2=b2, wm=wm, bm=bm, ws=ws, bs=bs)


def actor_forward_ref(state, p):
    """Plain-JAX f32 reference for validation."""
    h1 = jnp.maximum(state @ p["w1"] + p["b1"], 0.0)
    h2 = jnp.maximum(h1 @ p["w2"] + p["b2"], 0.0)
    mean = h2 @ p["wm"] + p["bm"]
    log_std = jnp.clip(h2 @ p["ws"] + p["bs"], -5.0, 2.0)
    return mean, jnp.exp(log_std)


if __name__ == "__main__":
    # Small shapes consistent with the module: batch=8, num_states=16,
    # hidden_size=32, num_actions=4.
    B, NUM_STATES, HIDDEN, NUM_ACTIONS = 8, 16, 32, 4

    key = jax.random.PRNGKey(0)
    state = jax.random.normal(key, (B, NUM_STATES), jnp.float32)

    params = init_actor_params(NUM_STATES, NUM_ACTIONS, HIDDEN, seed=42)
    w_packed, b_packed = pack_actor_params(params, NUM_STATES, NUM_ACTIONS, HIDDEN)

    mean, std = actor_forward(state, w_packed, b_packed, num_actions=NUM_ACTIONS)
    jax.block_until_ready((mean, std))

    # correctness check against a pure-f32 JAX reference
    # (tolerance reflects intentionally-bf16 MXU operands)
    mean_ref, std_ref = actor_forward_ref(state, params)
    assert mean.shape == (B, NUM_ACTIONS) and std.shape == (B, NUM_ACTIONS)
    assert jnp.allclose(mean, mean_ref, atol=2e-2, rtol=2e-2)
    assert jnp.allclose(std, std_ref, atol=2e-2, rtol=2e-2)
    assert bool(jnp.all(std > 0.0))

    # TODO(synk): torch.distributions.Normal object itself has no Pallas
    # equivalent; the kernel returns (mean, std) which parameterize it.
    print("KERNEL_OK")
</pallas_src>

<mosaic_0001>
module attributes {stable_mosaic.version = 11 : i64} {
  func.func @_actor_kernel(%arg0: i32, %arg1: memref<8x16xf32, #tpu.memory_space<vmem>>, %arg2: memref<272x128xbf16, #tpu.memory_space<vmem>>, %arg3: memref<3x128xf32, #tpu.memory_space<vmem>>, %arg4: memref<8x128xf32, #tpu.memory_space<vmem>>) attributes {dimension_semantics = [#tpu.dimension_semantics<parallel>], iteration_bounds = array<i64: 1>, scalar_prefetch = 0 : i64, scratch_operands = 0 : i64, tpu.core_type = #tpu.core_type<tc>, window_params = [{transform_indices = @transform_0, window_bounds = array<i64: 8, 16>}, {pipeline_mode = #tpu.pipeline_mode<synchronous>, transform_indices = @transform_1, window_bounds = array<i64: 272, 128>}, {pipeline_mode = #tpu.pipeline_mode<synchronous>, transform_indices = @transform_2, window_bounds = array<i64: 3, 128>}, {transform_indices = @transform_3, window_bounds = array<i64: 8, 128>}]} {
    %c0 = arith.constant 0 : index
    %c0_0 = arith.constant 0 : index
    %0 = vector.load %arg1[%c0, %c0_0] : memref<8x16xf32, #tpu.memory_space<vmem>>, vector<8x16xf32>
    %1 = arith.truncf %0 : vector<8x16xf32> to vector<8x16xbf16>
    %c0_1 = arith.constant 0 : index
    %c0_2 = arith.constant 0 : index
    %2 = vector.load %arg2[%c0_1, %c0_2] : memref<272x128xbf16, #tpu.memory_space<vmem>>, vector<16x128xbf16>
    %c16 = arith.constant 16 : index
    %c0_3 = arith.constant 0 : index
    %3 = vector.load %arg2[%c16, %c0_3] : memref<272x128xbf16, #tpu.memory_space<vmem>>, vector<128x128xbf16>
    %c144 = arith.constant 144 : index
    %c0_4 = arith.constant 0 : index
    %4 = vector.load %arg2[%c144, %c0_4] : memref<272x128xbf16, #tpu.memory_space<vmem>>, vector<128x128xbf16>
    %c0_5 = arith.constant 0 : index
    %c0_6 = arith.constant 0 : index
    %5 = vector.load %arg3[%c0_5, %c0_6] : memref<3x128xf32, #tpu.memory_space<vmem>>, vector<3x128xf32>
    %6 = vector.extract_strided_slice %5 {offsets = [0, 0], sizes = [1, 128], strides = [1, 1]} : vector<3x128xf32> to vector<1x128xf32>
    %7 = vector.extract_strided_slice %5 {offsets = [1, 0], sizes = [1, 128], strides = [1, 1]} : vector<3x128xf32> to vector<1x128xf32>
    %8 = vector.extract_strided_slice %5 {offsets = [2, 0], sizes = [1, 128], strides = [1, 1]} : vector<3x128xf32> to vector<1x128xf32>
    %cst = arith.constant dense<0.000000e+00> : vector<8x128xf32>
    %9 = tpu.matmul %1, %2, %cst {dimension_numbers = #tpu.dot_dimension_numbers<[1], [0], [0], [1], [0, 0, 1, 1], [], []>} : vector<8x16xbf16>, vector<16x128xbf16>, vector<8x128xf32> -> vector<8x128xf32>
    %10 = vector.broadcast %6 : vector<1x128xf32> to vector<8x128xf32>
    %11 = arith.addf %9, %10 : vector<8x128xf32>
    %cst_7 = arith.constant 0.000000e+00 : f32
    %12 = vector.broadcast %cst_7 : f32 to vector<8x128xf32>
    %13 = arith.maximumf %11, %12 : vector<8x128xf32>
    %14 = arith.truncf %13 : vector<8x128xf32> to vector<8x128xbf16>
    %cst_8 = arith.constant dense<0.000000e+00> : vector<8x128xf32>
    %15 = tpu.matmul %14, %3, %cst_8 {dimension_numbers = #tpu.dot_dimension_numbers<[1], [0], [0], [1], [0, 0, 1, 1], [], []>} : vector<8x128xbf16>, vector<128x128xbf16>, vector<8x128xf32> -> vector<8x128xf32>
    %16 = vector.broadcast %7 : vector<1x128xf32> to vector<8x128xf32>
    %17 = arith.addf %15, %16 : vector<8x128xf32>
    %cst_9 = arith.constant 0.000000e+00 : f32
    %18 = vector.broadcast %cst_9 : f32 to vector<8x128xf32>
    %19 = arith.maximumf %17, %18 : vector<8x128xf32>
    %20 = arith.truncf %19 : vector<8x128xf32> to vector<8x128xbf16>
    %cst_10 = arith.constant dense<0.000000e+00> : vector<8x128xf32>
    %21 = tpu.matmul %20, %4, %cst_10 {dimension_numbers = #tpu.dot_dimension_numbers<[1], [0], [0], [1], [0, 0, 1, 1], [], []>} : vector<8x128xbf16>, vector<128x128xbf16>, vector<8x128xf32> -> vector<8x128xf32>
    %22 = vector.broadcast %8 : vector<1x128xf32> to vector<8x128xf32>
    %23 = arith.addf %21, %22 : vector<8x128xf32>
    %24 = tpu.iota {dimensions = array<i32: 1>} : vector<8x128xi32>
    %cst_11 = arith.constant -5.000000e+00 : f32
    %cst_12 = arith.constant 2.000000e+00 : f32
    %25 = vector.broadcast %cst_11 : f32 to vector<8x128xf32>
    %26 = arith.maximumf %25, %23 : vector<8x128xf32>
    %27 = vector.broadcast %cst_12 : f32 to vector<8x128xf32>
    %28 = arith.minimumf %27, %26 : vector<8x128xf32>
    %29 = math.exp %28 : vector<8x128xf32>
    %c4_i32 = arith.constant 4 : i32
    %30 = vector.broadcast %c4_i32 : i32 to vector<8x128xi32>
    %31 = arith.cmpi slt, %24, %30 : vector<8x128xi32>
    %32 = arith.select %31, %23, %29 : vector<8x128xi1>, vector<8x128xf32>
    %c0_13 = arith.constant 0 : index
    %c0_14 = arith.constant 0 : index
    %33 = vector.load %arg4[%c0_13, %c0_14] : memref<8x128xf32, #tpu.memory_space<vmem>>, vector<8x128xf32>
    tpu.vector_store %arg4[%c0_13, %c0_14], %32 {strides = array<i32>} : memref<8x128xf32, #tpu.memory_space<vmem>>, vector<8x128xf32>,
    return
  }
  func.func @transform_0(%arg0: i32) -> (i32, i32) {
    %c0_i32 = arith.constant 0 : i32
    %c0_i32_0 = arith.constant 0 : i32
    return %arg0, %c0_i32 : i32, i32
  }
  func.func @transform_1(%arg0: i32) -> (i32, i32) {
    %c0_i32 = arith.constant 0 : i32
    %c0_i32_0 = arith.constant 0 : i32
    %c0_i32_1 = arith.constant 0 : i32
    return %c0_i32, %c0_i32_0 : i32, i32
  }
  func.func @transform_2(%arg0: i32) -> (i32, i32) {
    %c0_i32 = arith.constant 0 : i32
    %c0_i32_0 = arith.constant 0 : i32
    %c0_i32_1 = arith.constant 0 : i32
    return %c0_i32, %c0_i32_0 : i32, i32
  }
  func.func @transform_3(%arg0: i32) -> (i32, i32) {
    %c0_i32 = arith.constant 0 : i32
    %c0_i32_0 = arith.constant 0 : i32
    return %arg0, %c0_i32 : i32, i32
  }
}

</mosaic_0001>

<bundles_post_ra>
// kernel: tpu_custom_call.1
= control target key start
LH: loop header
LB: loop body
LE: loop exit
PB: predicated region body
PF: predicated region fallthrough
CT: control target
= control target key end

     0   :  { %8 = vsyncpa [#allocation3], 0  ;;  %s621_s0 = inlined_call_operand.hbm [shape: f32[8,16], index: 0, kind: input, shape index: {}]   ;;  %s622_s1 = inlined_call_operand.hbm [shape: bf16[272,128], index: 1, kind: input, shape index: {}]   ;;  %s623_s2 = inlined_call_operand.vmem [shape: f32[3,128], index: 2, kind: input, shape index: {}]   ;;  %s624_s3 = inlined_call_operand.hbm [shape: f32[8,128], index: 3, kind: output, shape index: {}]  }
   0x1   :  { %9 = vsyncpa [#allocation6], 0 }
   0x2   :  { %10 = vsyncpa [#allocation4], 0  ;;  %s528_s12 = smov [#allocation2]   ;;  %s529_s14 = smov [#allocation5]  }
   0x3   :  { %s17_s13 = sshll.u32 %s528_s12, 4  ;;  %s26_s15 = sshll.u32 %s529_s14, 4  ;;  %s18_s13 = int_to_ptr.vmem [resolvable:$true] %s17_s13  ;;  %s555_s15 = int_to_ptr.vmem [resolvable:$true] %s26_s15 }
   0x4   :  { %s456_s18 = scalar_lea.hbm %s621_s0, 128 }
   0x5   :  { %p457_p0 = scmp.ne.s32.totalorder %s621_s0, %s456_s18  ;;  %p460_p1 = scmp.lt.u32.totalorder %s456_s18, %s621_s0 }
   0x7   :  { %p462_p2 = pnand %p460_p1, %p457_p0 }
   0x9   :  { %465 = shalt.err (!%p462_p2)
}
   0xa   :  { %s466_s23 = scalar_lea.vmem %s18_s13, 128  ;;  %p471_p4 = scmp.lt.s32.totalorder %s18_s13, %s18_s13 }
   0xb   :  { %p467_p3 = scmp.ne.s32.totalorder %s18_s13, %s466_s23  ;;  %p472_p5 = scmp.lt.s32.totalorder %s466_s23, %s466_s23 }
   0xd   :  { %p473_p6 = por %p472_p5, %p471_p4 }
   0xf   :  { %p474_p7 = pnand %p473_p6, %p467_p3 }
  0x11   :  { %477 = shalt.err (!%p474_p7)
}
  0x12   :  { %20 = dma.hbm_to_vmem [thread:$0]  %s621_s0, 128, %s18_s13, [#allocation3]  }
  0x13   :  { %s478_s28 = scalar_lea.hbm %s622_s1, 2176 }
  0x14   :  { %p479_p8 = scmp.ne.s32.totalorder %s622_s1, %s478_s28  ;;  %p482_p9 = scmp.lt.u32.totalorder %s478_s28, %s622_s1 }
  0x16   :  { %p484_p10 = pnand %p482_p9, %p479_p8 }
  0x18   :  { %487 = shalt.err (!%p484_p10)
}
  0x19   :  { %s488_s6 = scalar_lea.vmem %s555_s15, 2176  ;;  %p493_p12 = scmp.lt.s32.totalorder %s555_s15, %s555_s15 }
  0x1a   :  { %p489_p11 = scmp.ne.s32.totalorder %s555_s15, %s488_s6  ;;  %p494_p13 = scmp.lt.s32.totalorder %s488_s6, %s488_s6 }
  0x1c   :  { %p495_p0 = por %p494_p13, %p493_p12 }
  0x1e   :  { %p496_p1 = pnand %p495_p0, %p489_p11 }
  0x20   :  { %499 = shalt.err (!%p496_p1)
}
  0x21   :  { %s530_s0 = smov 64   ;;  %s531_s7 = smov 4  }
  0x22   :  { %32 = dma.hbm_to_vmem [thread:$0]  %s622_s1, 2176, %s555_s15, [#allocation6], %s530_s0, %s530_s0, %s531_s7  }
  0x23   :  { %522 = dma.done.wait [#allocation3], 128  }
  0x24   :  { %523 = vsyncadd [#allocation3], 4294967168 }
  0x25   :  { %524 = dma.done.wait [#allocation6], 2176  }
  0x26   :  { %525 = vsyncadd [#allocation6], 4294965120  ;;  %v532_v0 = vmov 0.0   ;;  %vm533_vm0 = vmmov 0   ;;  %v437_v1 = vld [vmem:[#allocation5] sm:$0xff]   ;;  %v42_v2 = vld [vmem:[#allocation2] sm:$0xff]  ;;  %v79_v18 = vlaneseq }
  0x27   :  { %384 = vmatprep.subr.bf16.mxu0 %v532_v0  ;;  %386 = vmatprep.mubr.msk.bf16.mxu0 %vm533_vm0, %v532_v0  ;;  %v43_v3 = vpack.c.bf16 %v42_v2, %v42_v2  ;;  %vm89_vm1 = vcmask 130048   ;;  %v438_v4 = vld [vmem:[#allocation5 + $0x8] sm:$0xff]   ;;  %v439_v5 = vld [vmem:[#allocation5 + $0x10] sm:$0xff]   ;;  %v440_v6 = vld [vmem:[#allocation5 + $0x18] sm:$0xff]  }
  0x28   :  { %390 = vmatprep.subr.bf16.mxu1 %v532_v0  ;;  %406 = vmatprep.mubr.msk.bf16.mxu1 %vm533_vm0, %v532_v0  ;;  %v441_v7 = vld [vmem:[#allocation5 + $0x20] sm:$0xff]   ;;  %v442_v8 = vld [vmem:[#allocation5 + $0x28] sm:$0xff]   ;;  %v443_v9 = vld [vmem:[#allocation5 + $0x30] sm:$0xff]   ;;  %v80_v19 = vshrl.u32 %v79_v18, 7  ;;  %v322_v51 = vand.u32 127, %v79_v18 }
  0x29   :  { %385 = vmatpush3.bf16.msra.mxu0 %v437_v1  ;;  %391 = vmatpush3.bf16.msra.mxu1 %v438_v4  ;;  %v444_v10 = vld [vmem:[#allocation5 + $0x38] sm:$0xff]   ;;  %v445_v11 = vld [vmem:[#allocation5 + $0x40] sm:$0xff]   ;;  %v446_v12 = vld [vmem:[#allocation5 + $0x48] sm:$0xff]  }
  0x2a   :  { %410 = vmatprep.subr.bf16.mxu0 %v532_v0  ;;  %392 = vmatprep.subr.bf16.mxu1 %v532_v0  ;;  %v447_v13 = vld [vmem:[#allocation5 + $0x50] sm:$0xff]   ;;  %v448_v14 = vld [vmem:[#allocation5 + $0x58] sm:$0xff]   ;;  %v449_v15 = vld [vmem:[#allocation5 + $0x60] sm:$0xff]   ;;  %v81_v20 = vsub.s32 0, %v80_v19  ;;  %v137_v32 = vsub.s32 1, %v80_v19  ;;  %v231_v41 = vsub.s32 2, %v80_v19 }
  0x2b   :  { %v450_v16 = vld [vmem:[#allocation5 + $0x68] sm:$0xff]   ;;  %v451_v17 = vld [vmem:[#allocation5 + $0x70] sm:$0xff]   ;;  %v78_v21 = vld [vmem:[%s623_s2] sm:$0x7]  ;;  %s534_s2 = smov [#allocation7]   ;;  %vm327_vm2 = vcmp.lt.s32.totalorder %v322_v51, 4 }
  0x2c   :  { %387 = vmatmul.mubr.msk.bf16.vlgmr.msra.gmra.mrb[0].mxu0 %vm89_vm1, %v43_v3  ;;  %v82_v22 = vrot.slane %v78_v21, %v81_v20  ;;  %v452_v30 = vld [vmem:[#allocation5 + $0x78] sm:$0xff]   ;;  %v453_v31 = vld [vmem:[#allocation5 + $0x80] sm:$0xff]   ;;  %v138_v33 = vrot.slane %v78_v21, %v137_v32  ;;  %v232_v42 = vrot.slane %v78_v21, %v231_v41  ;;  %s336_s11 = sshll.u32 %s534_s2, 4  ;;  %s337_s11 = int_to_ptr.vmem [resolvable:$true] %s336_s11 }
  0x2d   :  { %426 = vmatprep.mubr.msk.bf16.mxu0 %vm533_vm0, %v532_v0  ;;  %393 = vmatpush3.bf16.msra.mxu1 %v439_v5  ;;  %s500_s12 = scalar_lea.vmem %s337_s11, 128  ;;  %p505_p3 = scmp.lt.s32.totalorder %s337_s11, %s337_s11 }
  0x2e   :  { %394 = vmatprep.subr.bf16.mxu1 %v532_v0  ;;  %411 = vmatpush3.bf16.msra.mxu0 %v446_v12  ;;  %p501_p2 = scmp.ne.s32.totalorder %s337_s11, %s500_s12  ;;  %p506_p4 = scmp.lt.s32.totalorder %s500_s12, %s500_s12 }
  0x2f   :  { %412 = vmatprep.subr.bf16.mxu0 %v532_v0 }
  0x30   :  { %p507_p5 = por %p506_p4, %p505_p3 }
  0x31   :  { %395 = vmatpush3.bf16.msra.mxu1 %v440_v6 }
  0x32   :  { %396 = vmatprep.subr.bf16.mxu1 %v532_v0  ;;  %413 = vmatpush3.bf16.msra.mxu0 %v447_v13  ;;  %p508_p6 = pnand %p507_p5, %p501_p2 }
  0x33   :  { %414 = vmatprep.subr.bf16.mxu0 %v532_v0 }
  0x35   :  { %397 = vmatpush3.bf16.msra.mxu1 %v441_v7 }
  0x36   :  { %398 = vmatprep.subr.bf16.mxu1 %v532_v0  ;;  %415 = vmatpush3.bf16.msra.mxu0 %v448_v14 }
  0x37   :  { %416 = vmatprep.subr.bf16.mxu0 %v532_v0 }
  0x39   :  { %399 = vmatpush3.bf16.msra.mxu1 %v442_v8 }
  0x3a   :  { %400 = vmatprep.subr.bf16.mxu1 %v532_v0  ;;  %417 = vmatpush3.bf16.msra.mxu0 %v449_v15 }
  0x3b   :  { %418 = vmatprep.subr.bf16.mxu0 %v532_v0 }
  0x3d   :  { %401 = vmatpush3.bf16.msra.mxu1 %v443_v9 }
  0x3e   :  { %402 = vmatprep.subr.bf16.mxu1 %v532_v0  ;;  %419 = vmatpush3.bf16.msra.mxu0 %v450_v16 }
  0x3f   :  { %420 = vmatprep.subr.bf16.mxu0 %v532_v0 }
  0x41   :  { %403 = vmatpush3.bf16.msra.mxu1 %v444_v10 }
  0x42   :  { %404 = vmatprep.subr.bf16.mxu1 %v532_v0  ;;  %421 = vmatpush3.bf16.msra.mxu0 %v451_v17 }
  0x43   :  { %422 = vmatprep.subr.bf16.mxu0 %v532_v0 }
  0x45   :  { %405 = vmatpush3.bf16.msra.mxu1 %v445_v11 }
  0x46   :  { %423 = vmatpush3.bf16.msra.mxu0 %v452_v30 }
  0x47   :  { %424 = vmatprep.subr.bf16.mxu0 %v532_v0 }
  0x4a   :  { %425 = vmatpush3.bf16.msra.mxu0 %v453_v31 }
  0xff   :  { %v127_v23 = vpop.f32.mrb[0].mxu0 }
 0x100   :  { %v128_v24 = vadd.f32 %v127_v23, %v82_v22  ;;  %v388_v25 = vpop.f32.mrb[1].mxu0 }
 0x101   :  { %v130_v26 = vpop.f32.mrb[2].mxu0 }
 0x102   :  { %v133_v27 = vmax.f32 %v128_v24, 0.0  ;;  %v389_v28 = vpop.f32.mrb[3].mxu0 }
 0x104   :  { %v134_v29 = vpack.c.bf16 %v133_v27, %v133_v27 }
 0x106   :  { %407 = vmatmul.mubr.bf16.vlgmr.msra.gmra.mrb[0].mxu1 %v134_v29 }
 0x1d9   :  { %v221_v34 = vpop.f32.mrb[0].mxu1 }
 0x1da   :  { %v222_v35 = vadd.f32 %v221_v34, %v138_v33  ;;  %v408_v36 = vpop.f32.mrb[1].mxu1 }
 0x1db   :  { %v224_v37 = vpop.f32.mrb[2].mxu1 }
 0x1dc   :  { %v227_v38 = vmax.f32 %v222_v35, 0.0  ;;  %v409_v39 = vpop.f32.mrb[3].mxu1 }
 0x1de   :  { %v228_v40 = vpack.c.bf16 %v227_v38, %v227_v38 }
 0x1e0   :  { %427 = vmatmul.mubr.bf16.vlgmr.msra.gmra.mrb[4].mxu0 %v228_v40 }
 0x2b3   :  { %v315_v43 = vpop.f32.mrb[4].mxu0 }
 0x2b4   :  { %v316_v44 = vadd.f32 %v315_v43, %v232_v42  ;;  %v428_v45 = vpop.f32.mrb[5].mxu0 }
 0x2b5   :  { %v318_v46 = vpop.f32.mrb[6].mxu0 }
 0x2b6   :  { %v323_v47 = vmax.f32 %v316_v44, -5.0  ;;  %v429_v48 = vpop.f32.mrb[7].mxu0 }
 0x2b8   :  { %v324_v49 = vmin.f32 %v323_v47, 2.0 }
 0x2ba   :  { %v325_v50 = vmul.f32 1.442695, %v324_v49 }
 0x2bc   :  { %454 = vpow2.f32 %v325_v50 }
 0x2c6   :  { %v455_v52 = vpop.eup %454 }
 0x2c7   :  { %v328_v53 = vsel %vm327_vm2, %v316_v44, %v455_v52 }
 0x2c8   :  { %329 = vst [vmem:[#allocation7] sm:$0xff] %v328_v53 }
 0x2c9   :  { %511 = shalt.err (!%p508_p6)
}
 0x2ca   :  { %s512_s15 = scalar_lea.hbm %s624_s3, 128 }
 0x2cb   :  { %p513_p7 = scmp.ne.s32.totalorder %s624_s3, %s512_s15  ;;  %p516_p8 = scmp.lt.u32.totalorder %s512_s15, %s624_s3 }
 0x2cd   :  { %p518_p9 = pnand %p516_p8, %p513_p7 }
 0x2cf   :  { %521 = shalt.err (!%p518_p9)
}
 0x2d0   :  { %339 = dma.vmem_to_hbm [thread:$0]  %s337_s11, 128, %s624_s3, [#allocation4]  }
 0x2d1   :  { %526 = dma.done.wait [#allocation4], 128  }
 0x2d2   :  { %527 = vsyncadd [#allocation4], 4294967168 }
 0x2d3   :  { %343 = vsyncpa [#allocation3], 1 }
 0x2d4   :  { %344 = vsyncpa [#allocation6], 1 }
 0x2d5   :  { %345 = vsyncpa [#allocation4], 1 }

</bundles_post_ra>
